<compile_context>
chip_gen: v5e
topology: v5e:2x2
jax: 0.10.0
libtpu: 0.0.40
codegen_flags: <defaults>
</compile_context>

<pallas_src>
import functools

import jax
import jax.numpy as jnp
from jax.experimental import pallas as pl
from jax.experimental.pallas import tpu as pltpu


def _round_up(n, m):
    return ((n + m - 1) // m) * m


def _pick_unroll(T, max_unroll=4):
    """Largest divisor of T that is <= max_unroll (timesteps unrolled per grid step)."""
    for u in range(min(T, max_unroll), 0, -1):
        if T % u == 0:
            return u
    return 1


# ---------------------------------------------------------------------------
# Phase 1: input projection for all timesteps (parallel grid, off the recurrence)
# ---------------------------------------------------------------------------
def _xproj_kernel(x_ref, wxh_ref, b1_ref, out_ref):
    # out = x @ W_xh + b1   (bf16 operands, f32 accumulate; one broadcast per grid step)
    out_ref[...] = (
        jnp.dot(x_ref[...].astype(wxh_ref.dtype), wxh_ref[...],
                preferred_element_type=jnp.float32)
        + b1_ref[...]
    )


# ---------------------------------------------------------------------------
# Phase 2: serial recurrence, U timesteps unrolled per grid step
# ---------------------------------------------------------------------------
def _rnn_recurrent_kernel(unroll, batch, xproj_ref, h0_ref, whh_ref,
                          hid_ref, hT_ref):
    t = pl.program_id(0)

    # Initialize the VMEM-resident carry (the final-hidden output block) once.
    @pl.when(t == 0)
    def _():
        hT_ref[...] = h0_ref[...]

    h = hT_ref[...]                      # (B, H_pad) carry, f32
    for u in range(unroll):              # static unroll -> constant row offsets
        row = u * batch
        pre = xproj_ref[pl.ds(row, batch), :] + jnp.dot(
            h.astype(whh_ref.dtype), whh_ref[...],
            preferred_element_type=jnp.float32)
        h = jnp.tanh(pre)
        # TODO(synk): nn.Dropout(p=0.5) is identity in eval mode; training-mode
        # dropout would need an in-kernel pltpu.prng_seed/prng_random_bits mask here.
        hid_ref[pl.ds(row, batch), :] = h
    hT_ref[...] = h                      # one carry writeback per grid step


# ---------------------------------------------------------------------------
# Phase 3: output head (i2o GEMM + log_softmax), parallel over time chunks
# ---------------------------------------------------------------------------
def _head_kernel(hid_ref, w2_ref, b2_ref, out_ref):
    logits = (
        jnp.dot(hid_ref[...].astype(w2_ref.dtype), w2_ref[...],
                preferred_element_type=jnp.float32)
        + b2_ref[...]                    # padded lanes carry -1e30 -> excluded below
    )
    m = jnp.max(logits, axis=-1, keepdims=True)
    shifted = logits - m
    lse = jnp.log(jnp.sum(jnp.exp(shifted), axis=-1, keepdims=True))
    out_ref[...] = (shifted - lse).astype(out_ref.dtype)


# ---------------------------------------------------------------------------
# Wrapper
# ---------------------------------------------------------------------------
def rnn_forward_seq(x_seq, h0, w_i2h_t, b_i2h, w_i2o_t, b_i2o, *, max_unroll=4):
    """Run T recurrent steps.

    x_seq: [T, B, I], h0: [B, H], w_i2h_t: [I+H, H], b_i2h: [1, H],
    w_i2o_t: [H, O], b_i2o: [1, O]
    -> (log_probs [T, B, O], final hidden [B, H])
    """
    T, B, I = x_seq.shape
    H = h0.shape[1]
    O = w_i2o_t.shape[1]
    H_pad = _round_up(H, 128)
    O_pad = _round_up(O, 128)
    U = _pick_unroll(T, max_unroll)
    n_chunks = T // U
    rows = U * B                         # rows per streamed (time-folded) block
    TB = T * B

    # Split the i2h weight into x- and h- halves (removes in-kernel lane concat).
    wxh = w_i2h_t[:I, :]
    whh = w_i2h_t[I:, :]

    # Lane-pad feature dims to 128; padded hidden units stay exactly 0 (tanh(0)).
    # Weights go bf16 for the MXU (f32 accumulation); biases stay f32.
    wxh = jnp.pad(wxh, ((0, 0), (0, H_pad - H))).astype(jnp.bfloat16)
    whh = jnp.pad(whh, ((0, H_pad - H), (0, H_pad - H))).astype(jnp.bfloat16)
    w2 = jnp.pad(w_i2o_t, ((0, H_pad - H), (0, O_pad - O))).astype(jnp.bfloat16)
    b1 = jnp.pad(b_i2h, ((0, 0), (0, H_pad - H))).astype(jnp.float32)
    # Padded logit lanes get a huge negative bias (f32: exp -> 0, never the max).
    b2 = jnp.pad(b_i2o, ((0, 0), (0, O_pad - O)),
                 constant_values=-1e30).astype(jnp.float32)
    h0p = jnp.pad(h0, ((0, 0), (0, H_pad - H))).astype(jnp.float32)

    # Fold time into the row (sublane) axis -> pure 2-D blocks everywhere.
    x_flat = x_seq.reshape(TB, I).astype(jnp.float32)

    vmem = pl.BlockSpec(memory_space=pltpu.MemorySpace.VMEM)   # whole-array resident

    # ---- Phase 1: batched input projection (parallel) ----
    xproj = pl.pallas_call(
        _xproj_kernel,
        out_shape=jax.ShapeDtypeStruct((TB, H_pad), jnp.float32),
        grid_spec=pltpu.PrefetchScalarGridSpec(
            num_scalar_prefetch=0,
            grid=(n_chunks,),
            in_specs=[
                pl.BlockSpec((rows, I), lambda t: (t, 0)),     # x chunk
                vmem,                                          # W_xh (bf16)
                vmem,                                          # b1
            ],
            out_specs=pl.BlockSpec((rows, H_pad), lambda t: (t, 0)),
        ),
        compiler_params=pltpu.CompilerParams(
            dimension_semantics=("parallel",)),
    )(x_flat, wxh, b1)

    # ---- Phase 2: serial recurrence (arbitrary), U steps unrolled per grid step ----
    hid_flat, h_final = pl.pallas_call(
        functools.partial(_rnn_recurrent_kernel, U, B),
        out_shape=(
            jax.ShapeDtypeStruct((TB, H_pad), jnp.float32),    # hidden sequence
            jax.ShapeDtypeStruct((B, H_pad), jnp.float32),     # final hidden
        ),
        grid_spec=pltpu.PrefetchScalarGridSpec(
            num_scalar_prefetch=0,
            grid=(n_chunks,),
            in_specs=[
                pl.BlockSpec((rows, H_pad), lambda t: (t, 0)), # streamed xproj chunk
                vmem,                                          # h0
                vmem,                                          # W_hh (bf16, resident)
            ],
            out_specs=(
                pl.BlockSpec((rows, H_pad), lambda t: (t, 0)), # hidden sequence chunk
                pl.BlockSpec((B, H_pad), lambda t: (0, 0)),    # resident carry / final h
            ),
        ),
        compiler_params=pltpu.CompilerParams(
            dimension_semantics=("arbitrary",)),               # recurrent axis
    )(xproj, h0p, whh)

    # ---- Phase 3: output head (parallel) ----
    out_flat = pl.pallas_call(
        _head_kernel,
        out_shape=jax.ShapeDtypeStruct((TB, O_pad), jnp.float32),
        grid_spec=pltpu.PrefetchScalarGridSpec(
            num_scalar_prefetch=0,
            grid=(n_chunks,),
            in_specs=[
                pl.BlockSpec((rows, H_pad), lambda t: (t, 0)), # hidden chunk
                vmem,                                          # W_ho (bf16)
                vmem,                                          # b2
            ],
            out_specs=pl.BlockSpec((rows, O_pad), lambda t: (t, 0)),
        ),
        compiler_params=pltpu.CompilerParams(
            dimension_semantics=("parallel",)),
    )(hid_flat, w2, b2)

    # Slice padding away for the public API (tiny copy; fuse into consumer if hot).
    log_probs = out_flat.reshape(T, B, O_pad)[:, :, :O]
    return log_probs, h_final[:, :H]


def rnn_forward(x, h, w_i2h_t, b_i2h, w_i2o_t, b_i2o):
    """Single-step API matching RNN.forward(input1, hidden1) -> (output, hidden)."""
    out_seq, h_new = rnn_forward_seq(x[None], h, w_i2h_t, b_i2h, w_i2o_t, b_i2o)
    return out_seq[0], h_new


def init_params(key, input_size, hidden_size, output_size):
    """Deterministic PyTorch-Linear-style init: U(-1/sqrt(fan_in), 1/sqrt(fan_in))."""
    k1, k2, k3, k4 = jax.random.split(key, 4)
    fan1 = input_size + hidden_size
    bound1 = 1.0 / jnp.sqrt(jnp.float32(fan1))
    w_i2h = jax.random.uniform(k1, (hidden_size, fan1), jnp.float32, -bound1, bound1)
    b_i2h = jax.random.uniform(k2, (hidden_size,), jnp.float32, -bound1, bound1)
    bound2 = 1.0 / jnp.sqrt(jnp.float32(hidden_size))
    w_i2o = jax.random.uniform(k3, (output_size, hidden_size), jnp.float32, -bound2, bound2)
    b_i2o = jax.random.uniform(k4, (output_size,), jnp.float32, -bound2, bound2)
    # Pre-transposed weights, 2-D biases (kernel layout).
    return (w_i2h.T, b_i2h.reshape(1, -1), w_i2o.T, b_i2o.reshape(1, -1))


if __name__ == "__main__":
    input_size, hidden_size, output_size = 16, 32, 8
    batch, seq_len = 8, 8     # batch=8 fills all sublanes

    key = jax.random.PRNGKey(0)
    kx, kp = jax.random.split(key, 2)
    x_seq = jax.random.normal(kx, (seq_len, batch, input_size), jnp.float32)
    h0 = jnp.zeros((batch, hidden_size), jnp.float32)   # RNN.initHidden
    params = init_params(kp, input_size, hidden_size, output_size)

    # Fused-sequence path (T steps, 3 kernels total).
    log_probs_seq, h_final = rnn_forward_seq(x_seq, h0, *params)
    jax.block_until_ready((log_probs_seq, h_final))

    # Single-step API (exact semantics of the original RNN.forward).
    log_probs_1, h_1 = rnn_forward(x_seq[0], h0, *params)
    jax.block_until_ready((log_probs_1, h_1))

    # Pure-JAX f32 reference of the original module (eval mode, dropout = identity).
    def ref_step(h, x, w1t, b1, w2t, b2):
        combined = jnp.concatenate([x, h], axis=1)
        hid = jnp.tanh(jnp.dot(combined, w1t, precision=jax.lax.Precision.HIGHEST) + b1)
        logits = jnp.dot(hid, w2t, precision=jax.lax.Precision.HIGHEST) + b2
        return hid, jax.nn.log_softmax(logits, axis=-1)

    h_ref = h0
    outs, hids = [], []
    for t in range(seq_len):
        h_ref, o = ref_step(h_ref, x_seq[t], *params)
        outs.append(o)
        hids.append(h_ref)
    out_ref_seq = jnp.stack(outs)

    assert log_probs_seq.shape == (seq_len, batch, output_size)
    assert h_final.shape == (batch, hidden_size)
    # log_softmax normalization (exact regardless of bf16 GEMM operands).
    assert jnp.allclose(jnp.sum(jnp.exp(log_probs_seq), axis=-1), 1.0, atol=1e-4)
    # bf16 MXU operands with f32 accumulation -> loose comparison vs f32 reference.
    assert jnp.allclose(log_probs_seq, out_ref_seq, atol=2e-2, rtol=2e-2)
    assert jnp.allclose(h_final, hids[-1], atol=2e-2, rtol=2e-2)
    assert jnp.allclose(log_probs_1, out_ref_seq[0], atol=2e-2, rtol=2e-2)
    assert jnp.allclose(h_1, hids[0], atol=2e-2, rtol=2e-2)

    print("KERNEL_OK")
</pallas_src>

<mosaic_0001>
module attributes {stable_mosaic.version = 11 : i64} {
  func.func @_xproj_kernel(%arg0: i32, %arg1: memref<32x16xf32, #tpu.memory_space<vmem>>, %arg2: memref<16x128xbf16, #tpu.memory_space<vmem>>, %arg3: memref<1x128xf32, #tpu.memory_space<vmem>>, %arg4: memref<32x128xf32, #tpu.memory_space<vmem>>) attributes {dimension_semantics = [#tpu.dimension_semantics<parallel>], iteration_bounds = array<i64: 2>, scalar_prefetch = 0 : i64, scratch_operands = 0 : i64, tpu.core_type = #tpu.core_type<tc>, window_params = [{transform_indices = @transform_0, window_bounds = array<i64: 32, 16>}, {pipeline_mode = #tpu.pipeline_mode<synchronous>, transform_indices = @transform_1, window_bounds = array<i64: 16, 128>}, {pipeline_mode = #tpu.pipeline_mode<synchronous>, transform_indices = @transform_2, window_bounds = array<i64: 1, 128>}, {transform_indices = @transform_3, window_bounds = array<i64: 32, 128>}]} {
    %c0 = arith.constant 0 : index
    %c0_0 = arith.constant 0 : index
    %0 = vector.load %arg1[%c0, %c0_0] : memref<32x16xf32, #tpu.memory_space<vmem>>, vector<32x16xf32>
    %1 = arith.truncf %0 : vector<32x16xf32> to vector<32x16xbf16>
    %c0_1 = arith.constant 0 : index
    %c0_2 = arith.constant 0 : index
    %2 = vector.load %arg2[%c0_1, %c0_2] : memref<16x128xbf16, #tpu.memory_space<vmem>>, vector<16x128xbf16>
    %cst = arith.constant dense<0.000000e+00> : vector<32x128xf32>
    %3 = tpu.matmul %1, %2, %cst {dimension_numbers = #tpu.dot_dimension_numbers<[1], [0], [0], [1], [0, 0, 1, 1], [], []>} : vector<32x16xbf16>, vector<16x128xbf16>, vector<32x128xf32> -> vector<32x128xf32>
    %c0_3 = arith.constant 0 : index
    %c0_4 = arith.constant 0 : index
    %4 = vector.load %arg3[%c0_3, %c0_4] : memref<1x128xf32, #tpu.memory_space<vmem>>, vector<1x128xf32>
    %5 = vector.broadcast %4 : vector<1x128xf32> to vector<32x128xf32>
    %6 = arith.addf %3, %5 : vector<32x128xf32>
    %c0_5 = arith.constant 0 : index
    %c0_6 = arith.constant 0 : index
    %7 = vector.load %arg4[%c0_5, %c0_6] : memref<32x128xf32, #tpu.memory_space<vmem>>, vector<32x128xf32>
    tpu.vector_store %arg4[%c0_5, %c0_6], %6 {strides = array<i32>} : memref<32x128xf32, #tpu.memory_space<vmem>>, vector<32x128xf32>,
    return
  }
  func.func @transform_0(%arg0: i32) -> (i32, i32) {
    %c0_i32 = arith.constant 0 : i32
    %c0_i32_0 = arith.constant 0 : i32
    return %arg0, %c0_i32 : i32, i32
  }
  func.func @transform_1(%arg0: i32) -> (i32, i32) {
    %c0_i32 = arith.constant 0 : i32
    %c0_i32_0 = arith.constant 0 : i32
    %c0_i32_1 = arith.constant 0 : i32
    return %c0_i32, %c0_i32_0 : i32, i32
  }
  func.func @transform_2(%arg0: i32) -> (i32, i32) {
    %c0_i32 = arith.constant 0 : i32
    %c0_i32_0 = arith.constant 0 : i32
    %c0_i32_1 = arith.constant 0 : i32
    return %c0_i32, %c0_i32_0 : i32, i32
  }
  func.func @transform_3(%arg0: i32) -> (i32, i32) {
    %c0_i32 = arith.constant 0 : i32
    %c0_i32_0 = arith.constant 0 : i32
    return %arg0, %c0_i32 : i32, i32
  }
}

</mosaic_0001>

<bundles_post_ra>
// kernel: tpu_custom_call.1
= control target key start
LH: loop header
LB: loop body
LE: loop exit
PB: predicated region body
PF: predicated region fallthrough
CT: control target
= control target key end

     0   :  { %8 = vsyncpa [#allocation3], 0  ;;  %s538_s0 = inlined_call_operand.vmem [shape: f32[64,16], index: 0, kind: input, shape index: {}]   ;;  %s539_s1 = inlined_call_operand.vmem [shape: bf16[16,128], index: 1, kind: input, shape index: {}]   ;;  %s540_s2 = inlined_call_operand.vmem [shape: f32[1,128], index: 2, kind: input, shape index: {}]   ;;  %s541_s3 = inlined_call_operand.hbm [shape: f32[64,128], index: 3, kind: output, shape index: {}]  }
   0x1   :  { %10 = vsyncpa [#allocation3 + $0x1], 0  ;;  %s448_s12 = smov 0   ;;  %s450_s13 = smov 0  }
   0x2   :  { %s452_s14 = smov 0   ;;  %s454_s15 = smov 0  }
   0x3 LB: > { %s469_s16 = sadd.s32 4294967295, %s424_s15   ;;  %s299_s17 = sadd.s32 4294967294, %s424_s15   ;;  %s424_s15 = sphi %s454_s15, %s547_s15   ;;  %s420_s14 = sphi %s452_s14, %s546_s14   ;;  %s416_s13 = sphi %s450_s13, %s545_s13   ;;  %s412_s12 = sphi %s448_s12, %s544_s12  }
   0x4   : > { %s473_s18 = sadd.s32 1, %s424_s15   ;;  %s91_s19 = sadd.s32 1, %s420_s14 }
   0x5   : > { %s88_s20 = ssub.s32 %s424_s15, %s473_s18  ;;  %p101_p0 = scmp.ne.s32.totalorder %s420_s14, %s416_s13 }
   0x6   : > { %p89_p1 = scmp.eq.s32.totalorder %s88_s20, 0  ;;  %p102_p2 = scmp.eq.s32.totalorder %s469_s16, 1 }
   0x7   : > { %p107_p3 = scmp.ne.s32.totalorder %s416_s13, %s412_s12  ;;  %p108_p4 = scmp.eq.s32.totalorder %s299_s17, 1 }
   0x8   : > { %s484_s21 = scalar_select %p89_p1, %s420_s14, %s91_s19  }
   0x9   : > { %p486_p5 = por %p102_p2, %p101_p0  ;;  %p490_p6 = por %p108_p4, %p107_p3 }
   0xa   : > { %p302_p7 = scmp.ge.s32.totalorder %s424_s15, 1  ;;  %p141_p8 = scmp.lt.s32.totalorder %s424_s15, 3 }
   0xc   : > { %p142_p9 = pnand %p302_p7, %p141_p8 }
   0xd   : > { %s304_s26 = sshll.u32 (!%p142_p9), %s469_s16, 2  ;;  %s162_s4 = sand.u32 (!%p142_p9), 1, %s416_s13  }
   0xe   : > { %145 = sbr.rel (%p142_p9) target bundleno = 166 (0xa6), region = 32  ;;  %p166_p10 = scmp.lt.s32.totalorder (!%p142_p9), %s304_s26, 7 }
   0xf   : > { %s303_s5 = sshll.u32 (!%p142_p9), %s162_s4, 5  ;;  %s318_s8 = sshll.u32 (!%p142_p9), %s469_s16, 5 }
  0x10   : > { %s164_s9 = scalar_lea.vmem (!%p142_p9), [#allocation2], %s303_s5  ;;  %s233_s17 = scalar_lea.hbm (!%p142_p9), %s541_s3, %s318_s8 }
  0x11   : > { %s234_s19 = sshll.u32 (!%p142_p9), %s164_s9, 4  ;;  %s236_s20 = sshll.u32 (!%p142_p9), %s233_s17, 4  ;;  %s235_s19 = int_to_ptr.vmem [resolvable:$true] %s234_s19  ;;  %s237_s20 = int_to_ptr.hbm [resolvable:$true] %s236_s20 }
  0x12   : > { %s222_s16 = scalar_lea.sflag (!%p142_p9), [#allocation3], %s162_s4  ;;  %s376_s24 = sshra.s32 (!%p142_p9), %s237_s20, 4  ;;  %s377_s24 = int_to_ptr.hbm [resolvable:$true] %s376_s24 }
  0x13   : > { %v317_v0 = vld [vmem:[%s539_s1] sm:$0xff]  ;;  %s549_s26 = smov (!%p166_p10, %s304_s26), 7  ;;  %vm191_vm0 = vcmask 130048   ;;  %s378_s25 = scalar_lea.hbm %s377_s24, 32 }
  0x14   : > { %205 = vmatpush.bf16.msra.mxu0 %v317_v0  ;;  %319 = vmatpush.bf16.msra.mxu1 %v317_v0  ;;  %s305_s27 = sshll.u32 %s549_s26, 3  ;;  %v361_v7 = vld [vmem:[%s540_s2] ss:$0 sm:$0xff]  ;;  %p379_p11 = scmp.ne.s32.totalorder %s377_s24, %s378_s25 }
  0x15   : > { %s169_s30 = scalar_lea.vmem %s538_s0, %s305_s27  ;;  %s382_s28 = scalar_lea.hbm %s541_s3, 64 }
  0x16   : > { %v173_v1 = vld [vmem:[%s169_s30] sm:$0xff]  ;;  %v174_v2 = vld [vmem:[%s169_s30 + $0x8] sm:$0xff]  ;;  %v175_v3 = vld [vmem:[%s169_s30 + $0x10] sm:$0xff]  ;;  %p380_p12 = pnand %p379_p11, %p486_p5  ;;  %p383_p0 = scmp.lt.s32.totalorder %s377_s24, %s541_s3 }
  0x17   : > { %v177_v4 = vpack.c.bf16 %v174_v2, %v173_v1  ;;  %v176_v5 = vld [vmem:[%s169_s30 + $0x18] sm:$0xff]  ;;  %p384_p1 = scmp.lt.s32.totalorder %s382_s28, %s378_s25 }
  0x18   : > { %v178_v6 = vpack.c.bf16 %v176_v5, %v175_v3  ;;  %p381_p13 = pneg %p380_p12 }
  0x19   : > { %310 = vmatmul.msk.bf16.vlgmr.msra.gmra.mxu0 %vm191_vm0, %v177_v4  ;;  %p385_p2 = por %p384_p1, %p383_p0 }
  0x1a   : > { %311 = vmatmul.msk.bf16.vlgmr.msra.gmra.mxu1 %vm191_vm0, %v178_v6 }
  0x1b   : > { %p386_p3 = pnand %p385_p2, %p381_p13 }
  0x96   : > { %v207_v8 = vpop.f32.mrf.mxu0 }
  0x97   : > { %v208_v9 = vadd.f32 %v361_v7, %v207_v8  ;;  %v212_v10 = vpop.f32.mrf.mxu1 }
  0x98   : > { %v213_v11 = vadd.f32 %v361_v7, %v212_v10 }
  0x99   : > { %217 = vst [vmem:[%s164_s9] sm:$0xff] %v208_v9 }
  0x9a   : > { %219 = vst [vmem:[%s164_s9 + $0x10] sm:$0xff] %v213_v11 }
  0x9e   : > { %v209_v12 = vpop.f32.mrf.mxu0 }
  0x9f   : > { %v210_v13 = vadd.f32 %v361_v7, %v209_v12  ;;  %v214_v14 = vpop.f32.mrf.mxu1 }
  0xa0   : > { %v215_v15 = vadd.f32 %v361_v7, %v214_v14 }
  0xa1   : > { %218 = vst [vmem:[%s164_s9 + $0x8] sm:$0xff] %v210_v13 }
  0xa2   : > { %220 = vst [vmem:[%s164_s9 + $0x18] sm:$0xff] %v215_v15 }
  0xa3   : > { %389 = shalt.err (!%p386_p3)
}
  0xa4   : > { %s426_s4 = smov 128   ;;  %s427_s5 = smov 8  }
  0xa5   : > { %320 = dma.vmem_to_hbm [thread:$0]  (%p486_p5), %s235_s19, 512, %s237_s20, %s222_s16, %s426_s4, %s426_s4, %s427_s5  }
  0xa6 PF: > { %p326_p4 = scmp.ge.s32.totalorder %s424_s15, 2  ;;  %s251_s6 = sand.u32 1, %s412_s12  }
  0xa7   : > { %s252_s7 = scalar_lea.sflag [#allocation3], %s251_s6 }
  0xa8   : > { %p323_p7 = pnand %p326_p4, %p490_p6 }
  0xaa   : > { %p324_p8 = pneg %p323_p7 }
  0xac   : > { %407 = dma.done.wait (%p324_p8), %s252_s7, 512  }
  0xad   : > { %409 = vsyncadd (%p324_p8), %s252_s7, 4294966784  ;;  %p13_p9 = scmp.ge.s32.totalorder %s473_s18, 4   ;;  %s544_s12 = smov %s416_s13 }
  0xae   : > { %s545_s13 = smov %s420_s14  ;;  %s546_s14 = smov %s484_s21 }
  0xaf   : > { %s547_s15 = smov %s473_s18  ;;  %15 = sbr.rel (!%p13_p9) target bundleno = 3 (0x3), region = 67 }
  0xb4   :  { %258 = vsyncpa [#allocation3], 1 }
  0xb5   :  { %260 = vsyncpa [#allocation3 + $0x1], 1 }

</bundles_post_ra>
